<compile_context>
chip_gen: v6e
topology: v6e:2x2x1
jax: 0.10.0
libtpu: 0.0.40
codegen_flags: <defaults>
</compile_context>

<pallas_src>
import functools

import jax
import jax.numpy as jnp
from jax.experimental import pallas as pl
from jax.experimental.pallas import tpu as pltpu


def _decoder_block_kernel(x_ref, w1_ref, b1_ref, w2_ref, b2_ref,
                          w3_ref, b3_ref, o_ref, *, out_factor, residual):
    # x_ref: (C_in, TL) channels-first tile (leading batch dim squeezed away).
    x = x_ref[...].astype(jnp.float32)

    # conv1 (1x1, BN1 scale folded into the weight) + fused bias + relu
    h = jnp.dot(w1_ref[...], x, preferred_element_type=jnp.float32)
    h = jnp.maximum(h + b1_ref[...], 0.0)

    # conv2 (1x1, BN2 scale folded into the weight) + fused bias + relu
    h = jnp.dot(w2_ref[...], h, preferred_element_type=jnp.float32)
    h = jnp.maximum(h + b2_ref[...], 0.0)

    # conv3 (1x1) -> 3 output channels
    out = jnp.dot(w3_ref[...], h, preferred_element_type=jnp.float32) + b3_ref[...]

    if residual:
        # coords = inp[:, :3] in NCL == first 3 channel rows of this tile
        out = out + x[:3, :] * out_factor

    o_ref[...] = out.astype(o_ref.dtype)


def _choose_position_tile(batch, c_in, length):
    """Pick the position tile TL.

    As large as possible (HBM-bound kernel: per-step overhead dominates small
    tiles) while keeping the double-buffered (C_in, TL) f32 input tile well
    under the default scoped-VMEM limit on every TPU generation (v5e: 16 MiB).
    """
    max_tile_bytes = 4 * 1024 * 1024            # per input buffer (x is double-buffered)
    max_tl = (max_tile_bytes // (4 * c_in)) // 128 * 128
    max_tl = max(128, min(max_tl, 2048))
    if length <= max_tl:
        tl = length                             # full-extent block: no 128 requirement
        # keep >= 2 grid steps when cheap, so both v7x TensorCores get work
        if batch == 1 and length % 256 == 0:
            tl = length // 2
        l_pad = ((length + tl - 1) // tl) * tl
    else:
        tl = max_tl
        l_pad = ((length + tl - 1) // tl) * tl
    return tl, l_pad


def decoder_block_forward(inp, params, *, out_factor=200.0, residual=True,
                          bn_eps=1e-5):
    """inp: (B, C_in, L) (PyTorch NCL convention). Returns (B, 3, L) float32."""
    B, C_in, L = inp.shape

    # --- fold eval-mode BatchNorm into the conv weights / biases ------------
    # bn(conv(x)) = (W x + b) * s + t = (s*W) x + (s*b + t)
    w1 = params["conv1_w"][:, :, 0].astype(jnp.float32)   # (R, C_in)
    w2 = params["conv2_w"][:, :, 0].astype(jnp.float32)   # (R, R)
    w3 = params["conv3_w"][:, :, 0].astype(jnp.float32)   # (3, R)
    R = w1.shape[0]

    def fold(gamma, beta, mean, var, conv_w, conv_b):
        s = (gamma / jnp.sqrt(var + bn_eps)).astype(jnp.float32)
        t = beta - mean * s
        return conv_w * s[:, None], conv_b * s + t

    w1s, b1 = fold(params["bn1_gamma"], params["bn1_beta"],
                   params["bn1_mean"], params["bn1_var"], w1, params["conv1_b"])
    w2s, b2 = fold(params["bn2_gamma"], params["bn2_beta"],
                   params["bn2_mean"], params["bn2_var"], w2, params["conv2_b"])
    b3 = params["conv3_b"]

    b1 = b1.reshape(R, 1).astype(jnp.float32)
    b2 = b2.reshape(R, 1).astype(jnp.float32)
    b3 = b3.reshape(3, 1).astype(jnp.float32)

    x = inp.astype(jnp.float32)

    # --- tiling: channels-first, grid over (batch, position tiles) ----------
    tl, l_pad = _choose_position_tile(B, C_in, L)
    if l_pad != L:
        x = jnp.pad(x, ((0, 0), (0, 0), (0, l_pad - L)))
    grid = (B, l_pad // tl)

    kernel = functools.partial(_decoder_block_kernel,
                               out_factor=float(out_factor),
                               residual=residual)

    def const(shape):
        return pl.BlockSpec(shape, lambda b, l: (0,) * len(shape))

    flops = 2 * B * L * (C_in * R + R * R + R * 3)
    bytes_accessed = 4 * (B * L * (C_in + 3) + C_in * R + R * R + 3 * R + 2 * R + 3)

    out = pl.pallas_call(
        kernel,
        out_shape=jax.ShapeDtypeStruct((B, 3, l_pad), jnp.float32),
        grid_spec=pltpu.PrefetchScalarGridSpec(
            num_scalar_prefetch=0,
            grid=grid,
            in_specs=[
                pl.BlockSpec((None, C_in, tl), lambda b, l: (b, 0, l)),  # x tile
                const((R, C_in)), const((R, 1)),                         # w1*s1, b1
                const((R, R)), const((R, 1)),                            # w2*s2, b2
                const((3, R)), const((3, 1)),                            # w3, b3
            ],
            out_specs=pl.BlockSpec((None, 3, tl), lambda b, l: (b, 0, l)),
        ),
        compiler_params=pltpu.CompilerParams(
            dimension_semantics=("parallel", "parallel")),
        cost_estimate=pl.CostEstimate(flops=flops, transcendentals=0,
                                      bytes_accessed=bytes_accessed),
    )(x, w1s, b1, w2s, b2, w3, b3)

    if l_pad != L:
        out = out[:, :, :L]
    return out


def make_params(key, bottleneck_size, res_size):
    ks = jax.random.split(key, 12)
    p = {
        "conv1_w": 0.1 * jax.random.normal(ks[0], (res_size, bottleneck_size, 1), jnp.float32),
        "conv1_b": 0.1 * jax.random.normal(ks[1], (res_size,), jnp.float32),
        "conv2_w": 0.1 * jax.random.normal(ks[2], (res_size, res_size, 1), jnp.float32),
        "conv2_b": 0.1 * jax.random.normal(ks[3], (res_size,), jnp.float32),
        "conv3_w": 0.1 * jax.random.normal(ks[4], (3, res_size, 1), jnp.float32),
        "conv3_b": 0.1 * jax.random.normal(ks[5], (3,), jnp.float32),
        "bn1_gamma": 1.0 + 0.1 * jax.random.normal(ks[6], (res_size,), jnp.float32),
        "bn1_beta": 0.1 * jax.random.normal(ks[7], (res_size,), jnp.float32),
        "bn1_mean": 0.1 * jax.random.normal(ks[8], (res_size,), jnp.float32),
        "bn1_var": 0.5 + jnp.abs(0.1 * jax.random.normal(ks[9], (res_size,), jnp.float32)),
        "bn2_gamma": 1.0 + 0.1 * jax.random.normal(ks[10], (res_size,), jnp.float32),
        "bn2_beta": 0.1 * jax.random.normal(ks[11], (res_size,), jnp.float32),
        "bn2_mean": jnp.zeros((res_size,), jnp.float32),
        "bn2_var": jnp.ones((res_size,), jnp.float32),
    }
    return p


def _reference(inp, params, out_factor=200.0, residual=True, eps=1e-5):
    # Pure-JAX reference of the PyTorch forward (eval-mode BN) for sanity check.
    def conv1d(x, w, b):  # x (B,C,L), w (O,C,1)
        return jnp.einsum("oc,bcl->bol", w[:, :, 0], x) + b[None, :, None]

    def bn(x, g, be, m, v):
        return g[None, :, None] * (x - m[None, :, None]) / jnp.sqrt(v[None, :, None] + eps) + be[None, :, None]

    coords = inp[:, :3]
    x = jax.nn.relu(bn(conv1d(inp, params["conv1_w"], params["conv1_b"]),
                       params["bn1_gamma"], params["bn1_beta"],
                       params["bn1_mean"], params["bn1_var"]))
    x = jax.nn.relu(bn(conv1d(x, params["conv2_w"], params["conv2_b"]),
                       params["bn2_gamma"], params["bn2_beta"],
                       params["bn2_mean"], params["bn2_var"]))
    x = conv1d(x, params["conv3_w"], params["conv3_b"])
    if residual:
        x = x + coords * out_factor
    return x


if __name__ == "__main__":
    # Small shapes consistent with DecoderBlock: bottleneck=32, res_size=16,
    # batch=2, seq(L)=16.
    B, BOTTLENECK, RES, L = 2, 32, 16, 16
    OUT_FACTOR = 200.0

    key = jax.random.PRNGKey(0)
    k_inp, k_par = jax.random.split(key)
    inp = jax.random.normal(k_inp, (B, BOTTLENECK, L), jnp.float32)
    params = make_params(k_par, BOTTLENECK, RES)

    out = decoder_block_forward(inp, params, out_factor=OUT_FACTOR, residual=True)
    out = jax.block_until_ready(out)

    ref = _reference(inp, params, out_factor=OUT_FACTOR, residual=True)
    assert out.shape == (B, 3, L), out.shape
    assert jnp.allclose(out, ref, atol=1e-4, rtol=1e-4), float(jnp.max(jnp.abs(out - ref)))

    print("KERNEL_OK")
</pallas_src>

<mosaic_0001>
module attributes {stable_mosaic.version = 11 : i64} {
  func.func @_decoder_block_kernel(%arg0: i32, %arg1: i32, %arg2: memref<1x32x16xf32, #tpu.memory_space<vmem>>, %arg3: memref<16x32xf32, #tpu.memory_space<vmem>>, %arg4: memref<16x1xf32, #tpu.memory_space<vmem>>, %arg5: memref<16x16xf32, #tpu.memory_space<vmem>>, %arg6: memref<16x1xf32, #tpu.memory_space<vmem>>, %arg7: memref<3x16xf32, #tpu.memory_space<vmem>>, %arg8: memref<3x1xf32, #tpu.memory_space<vmem>>, %arg9: memref<1x3x16xf32, #tpu.memory_space<vmem>>) attributes {dimension_semantics = [#tpu.dimension_semantics<parallel>, #tpu.dimension_semantics<parallel>], iteration_bounds = array<i64: 2, 1>, scalar_prefetch = 0 : i64, scratch_operands = 0 : i64, tpu.core_type = #tpu.core_type<tc>, window_params = [{transform_indices = @transform_0, window_bounds = array<i64: 1, 32, 16>}, {pipeline_mode = #tpu.pipeline_mode<synchronous>, transform_indices = @transform_1, window_bounds = array<i64: 16, 32>}, {pipeline_mode = #tpu.pipeline_mode<synchronous>, transform_indices = @transform_2, window_bounds = array<i64: 16, 1>}, {pipeline_mode = #tpu.pipeline_mode<synchronous>, transform_indices = @transform_3, window_bounds = array<i64: 16, 16>}, {pipeline_mode = #tpu.pipeline_mode<synchronous>, transform_indices = @transform_4, window_bounds = array<i64: 16, 1>}, {pipeline_mode = #tpu.pipeline_mode<synchronous>, transform_indices = @transform_5, window_bounds = array<i64: 3, 16>}, {pipeline_mode = #tpu.pipeline_mode<synchronous>, transform_indices = @transform_6, window_bounds = array<i64: 3, 1>}, {transform_indices = @transform_7, window_bounds = array<i64: 1, 3, 16>}]} {
    %c0 = arith.constant 0 : index
    %c0_0 = arith.constant 0 : index
    %c0_1 = arith.constant 0 : index
    %0 = vector.load %arg2[%c0, %c0_0, %c0_1] : memref<1x32x16xf32, #tpu.memory_space<vmem>>, vector<1x32x16xf32>
    %1 = vector.shape_cast %0 : vector<1x32x16xf32> to vector<32x16xf32>
    %c0_2 = arith.constant 0 : index
    %c0_3 = arith.constant 0 : index
    %2 = vector.load %arg3[%c0_2, %c0_3] : memref<16x32xf32, #tpu.memory_space<vmem>>, vector<16x32xf32>
    %cst = arith.constant dense<0.000000e+00> : vector<16x16xf32>
    %3 = tpu.matmul %2, %1, %cst {dimension_numbers = #tpu.dot_dimension_numbers<[1], [0], [0], [1], [0, 0, 1, 1], [], []>} : vector<16x32xf32>, vector<32x16xf32>, vector<16x16xf32> -> vector<16x16xf32>
    %c0_4 = arith.constant 0 : index
    %c0_5 = arith.constant 0 : index
    %4 = vector.load %arg4[%c0_4, %c0_5] : memref<16x1xf32, #tpu.memory_space<vmem>>, vector<16x1xf32>
    %5 = vector.broadcast %4 : vector<16x1xf32> to vector<16x16xf32>
    %6 = arith.addf %3, %5 : vector<16x16xf32>
    %cst_6 = arith.constant 0.000000e+00 : f32
    %7 = vector.broadcast %cst_6 : f32 to vector<16x16xf32>
    %8 = arith.maximumf %6, %7 : vector<16x16xf32>
    %c0_7 = arith.constant 0 : index
    %c0_8 = arith.constant 0 : index
    %9 = vector.load %arg5[%c0_7, %c0_8] : memref<16x16xf32, #tpu.memory_space<vmem>>, vector<16x16xf32>
    %cst_9 = arith.constant dense<0.000000e+00> : vector<16x16xf32>
    %10 = tpu.matmul %9, %8, %cst_9 {dimension_numbers = #tpu.dot_dimension_numbers<[1], [0], [0], [1], [0, 0, 1, 1], [], []>} : vector<16x16xf32>, vector<16x16xf32>, vector<16x16xf32> -> vector<16x16xf32>
    %c0_10 = arith.constant 0 : index
    %c0_11 = arith.constant 0 : index
    %11 = vector.load %arg6[%c0_10, %c0_11] : memref<16x1xf32, #tpu.memory_space<vmem>>, vector<16x1xf32>
    %12 = vector.broadcast %11 : vector<16x1xf32> to vector<16x16xf32>
    %13 = arith.addf %10, %12 : vector<16x16xf32>
    %cst_12 = arith.constant 0.000000e+00 : f32
    %14 = vector.broadcast %cst_12 : f32 to vector<16x16xf32>
    %15 = arith.maximumf %13, %14 : vector<16x16xf32>
    %c0_13 = arith.constant 0 : index
    %c0_14 = arith.constant 0 : index
    %16 = vector.load %arg7[%c0_13, %c0_14] : memref<3x16xf32, #tpu.memory_space<vmem>>, vector<3x16xf32>
    %cst_15 = arith.constant dense<0.000000e+00> : vector<3x16xf32>
    %17 = tpu.matmul %16, %15, %cst_15 {dimension_numbers = #tpu.dot_dimension_numbers<[1], [0], [0], [1], [0, 0, 1, 1], [], []>} : vector<3x16xf32>, vector<16x16xf32>, vector<3x16xf32> -> vector<3x16xf32>
    %c0_16 = arith.constant 0 : index
    %c0_17 = arith.constant 0 : index
    %18 = vector.load %arg8[%c0_16, %c0_17] : memref<3x1xf32, #tpu.memory_space<vmem>>, vector<3x1xf32>
    %19 = vector.broadcast %18 : vector<3x1xf32> to vector<3x16xf32>
    %20 = arith.addf %17, %19 : vector<3x16xf32>
    %21 = vector.extract_strided_slice %1 {offsets = [0, 0], sizes = [3, 16], strides = [1, 1]} : vector<32x16xf32> to vector<3x16xf32>
    %cst_18 = arith.constant 2.000000e+02 : f32
    %22 = vector.broadcast %cst_18 : f32 to vector<3x16xf32>
    %23 = arith.mulf %21, %22 : vector<3x16xf32>
    %24 = arith.addf %20, %23 : vector<3x16xf32>
    %c0_19 = arith.constant 0 : index
    %c0_20 = arith.constant 0 : index
    %c0_21 = arith.constant 0 : index
    %25 = vector.load %arg9[%c0_19, %c0_20, %c0_21] : memref<1x3x16xf32, #tpu.memory_space<vmem>>, vector<1x3x16xf32>
    %26 = vector.shape_cast %25 : vector<1x3x16xf32> to vector<3x16xf32>
    %27 = vector.shape_cast %24 : vector<3x16xf32> to vector<1x3x16xf32>
    tpu.vector_store %arg9[%c0_19, %c0_20, %c0_21], %27 {strides = array<i32>} : memref<1x3x16xf32, #tpu.memory_space<vmem>>, vector<1x3x16xf32>,
    return
  }
  func.func @transform_0(%arg0: i32, %arg1: i32) -> (i32, i32, i32) {
    %c0_i32 = arith.constant 0 : i32
    %c0_i32_0 = arith.constant 0 : i32
    return %arg0, %c0_i32, %arg1 : i32, i32, i32
  }
  func.func @transform_1(%arg0: i32, %arg1: i32) -> (i32, i32) {
    %c0_i32 = arith.constant 0 : i32
    %c0_i32_0 = arith.constant 0 : i32
    %c0_i32_1 = arith.constant 0 : i32
    return %c0_i32, %c0_i32_0 : i32, i32
  }
  func.func @transform_2(%arg0: i32, %arg1: i32) -> (i32, i32) {
    %c0_i32 = arith.constant 0 : i32
    %c0_i32_0 = arith.constant 0 : i32
    %c0_i32_1 = arith.constant 0 : i32
    return %c0_i32, %c0_i32_0 : i32, i32
  }
  func.func @transform_3(%arg0: i32, %arg1: i32) -> (i32, i32) {
    %c0_i32 = arith.constant 0 : i32
    %c0_i32_0 = arith.constant 0 : i32
    %c0_i32_1 = arith.constant 0 : i32
    return %c0_i32, %c0_i32_0 : i32, i32
  }
  func.func @transform_4(%arg0: i32, %arg1: i32) -> (i32, i32) {
    %c0_i32 = arith.constant 0 : i32
    %c0_i32_0 = arith.constant 0 : i32
    %c0_i32_1 = arith.constant 0 : i32
    return %c0_i32, %c0_i32_0 : i32, i32
  }
  func.func @transform_5(%arg0: i32, %arg1: i32) -> (i32, i32) {
    %c0_i32 = arith.constant 0 : i32
    %c0_i32_0 = arith.constant 0 : i32
    %c0_i32_1 = arith.constant 0 : i32
    return %c0_i32, %c0_i32_0 : i32, i32
  }
  func.func @transform_6(%arg0: i32, %arg1: i32) -> (i32, i32) {
    %c0_i32 = arith.constant 0 : i32
    %c0_i32_0 = arith.constant 0 : i32
    %c0_i32_1 = arith.constant 0 : i32
    return %c0_i32, %c0_i32_0 : i32, i32
  }
  func.func @transform_7(%arg0: i32, %arg1: i32) -> (i32, i32, i32) {
    %c0_i32 = arith.constant 0 : i32
    %c0_i32_0 = arith.constant 0 : i32
    return %arg0, %c0_i32, %arg1 : i32, i32, i32
  }
}

</mosaic_0001>

<bundles_post_ra>
// kernel: tpu_custom_call.1
= control target key start
LH: loop header
LB: loop body
LE: loop exit
PB: predicated region body
PF: predicated region fallthrough
CT: control target
= control target key end

     0   :  { %s819_s24 = smov 0   ;;  %s821_s25 = smov 0   ;;  %s891_s0 = inlined_call_operand.vmem [shape: f32[2,32,16], index: 0, kind: input, shape index: {}]   ;;  %s892_s1 = inlined_call_operand.vmem [shape: f32[16,32], index: 1, kind: input, shape index: {}]   ;;  %s893_s2 = inlined_call_operand.vmem [shape: f32[16,1], index: 2, kind: input, shape index: {}]   ;;  %s894_s3 = inlined_call_operand.vmem [shape: f32[16,16], index: 3, kind: input, shape index: {}]   ;;  %s895_s4 = inlined_call_operand.vmem [shape: f32[16,1], index: 4, kind: input, shape index: {}]   ;;  %s896_s5 = inlined_call_operand.vmem [shape: f32[3,16], index: 5, kind: input, shape index: {}]   ;;  %s897_s6 = inlined_call_operand.vmem [shape: f32[3,1], index: 6, kind: input, shape index: {}]   ;;  %s898_s7 = inlined_call_operand.vmem [shape: f32[2,3,16], index: 7, kind: output, shape index: {}]  }
   0x1   :  { %s823_s26 = smov 0  }
   0x2 LB: > { %s29_s27 = sadd.s32 1, %s770_s25  ;;  %p673_p0 = scmp.ge.s32.totalorder %s774_s26, 1  ;;  %s774_s26 = sphi %s823_s26, %s17_s26   ;;  %s770_s25 = sphi %s821_s25, %s900_s25   ;;  %s766_s24 = sphi %s819_s24, %s899_s24  }
   0x3   : > { %p31_p1 = scmp.ge.s32.totalorder %s29_s27, 2  ;;  %p256_p2 = scmp.lt.s32.totalorder %s774_s26, 3 }
   0x5   : > { %s902_s27 = smov (%p31_p1, %s29_s27), 0  ;;  %p257_p3 = pnand %p673_p0, %p256_p2 }
   0x6   : > { %p293_p4 = scmp.lt.s32.totalorder (!%p257_p3), %s766_s24, 1 }
   0x7   : > { %260 = sbr.rel (%p257_p3) target bundleno = 623 (0x26f), region = 48 }
   0xc   : > { %v312_v0 = vld [vmem:[%s892_s1] sm:$0xff]  ;;  %vm326_vm0 = vcmask 261120   ;;  %v315_v1 = vld [vmem:[%s893_s2 + $0x8] sm:$0xff]  ;;  %v776_v2 = vmov 0   ;;  %s904_s24 = smov (!%p293_p4, %s766_s24), 1  ;;  %vm424_vm1 = vcmask 130048  }
   0xd   : > { %706 = vmatprep.mubr.msk.f32.mxu0 %vm326_vm0, %v312_v0  ;;  %750 = vset.pattern.permute.xlu0 %v776_v2  ;;  %v314_v3 = vld [vmem:[%s893_s2] sm:$0xff]  ;;  %s684_s11 = sshll.u32 %s904_s24, 5  ;;  %v313_v9 = vld [vmem:[%s892_s1 + $0x8] sm:$0xff]  ;;  %v777_v22 = vmov 0.0   ;;  %vm778_vm2 = vmmov 0   ;;  %s676_s10 = sshll.u32 %s904_s24, 2 }
   0xe   : > { %323 = vperm.xlu0 %750, %v315_v1   ;;  %751 = vset.pattern.permute.xlu1 %v776_v2  ;;  %s300_s14 = scalar_lea.vmem %s891_s0, %s684_s11  ;;  %v509_v6 = vld [vmem:[%s897_s6] sm:$0x7]  ;;  %v413_v11 = vld [vmem:[%s895_s4 + $0x8] sm:$0xff]  ;;  %s307_s13 = scalar_lea.vmem %s898_s7, %s676_s10  ;;  %vm590_vm3 = vcmask 124928  }
   0xf   : > { %v311_v4 = vld [vmem:[%s300_s14 + $0x18] sm:$0xff]  ;;  %v310_v5 = vld [vmem:[%s300_s14 + $0x10] sm:$0xff]  ;;  %v309_v7 = vld [vmem:[%s300_s14 + $0x8] sm:$0xff]  ;;  %421 = vperm.xlu1 %751, %v413_v11  }
  0x10   : > { %698 = vmatprep.subr.mxu0 %v311_v4  ;;  %v308_v8 = vld [vmem:[%s300_s14] sm:$0xff]  ;;  %v411_v21 = vld [vmem:[%s894_s3 + $0x8] sm:$0xff] }
  0x11   : > { %699 = vmatpush3.msra.mxu0 %v311_v4  ;;  %v410_v10 = vld [vmem:[%s894_s3] sm:$0xff]  ;;  %v588_v32 = vmul.f32 200.0, %v308_v8 }
  0x12   : > { %318 = vperm.xlu0 %750, %v314_v3   ;;  %700 = vmatprep.subr.mxu0 %v310_v5  ;;  %v412_v12 = vld [vmem:[%s895_s4] sm:$0xff] }
  0x13   : > { %701 = vmatpush3.msra.mxu0 %v310_v5  ;;  %713 = vmatprep.mubr.msk.f32.mxu1 %vm424_vm1, %v410_v10  ;;  %v508_v31 = vld [vmem:[%s896_s5] sm:$0x7] }
  0x14   : > { %702 = vmatprep.subr.mxu0 %v309_v7  ;;  %416 = vperm.xlu1 %751, %v412_v12  }
  0x15   : > { %703 = vmatpush3.msra.mxu0 %v309_v7 }
  0x16   : > { %512 = vperm.xlu0 %750, %v509_v6   ;;  %704 = vmatprep.subr.mxu0 %v308_v8 }
  0x17   : > { %705 = vmatpush3.msra.mxu0 %v308_v8 }
  0x18   : > { %707 = vmatmul.mubr.msk.f32.vlgmr.msra.gmra.mxu0 %vm326_vm0, %v313_v9 }
  0x89   : > { %v324_v13 = vpop.permute.xlu0 %323 }
  0x8a   : > { %v422_v23 = vpop.permute.xlu1 %421 }
  0x8d   : > { %v319_v16 = vpop.permute.xlu0 %318 }
  0x8f   : > { %v417_v26 = vpop.permute.xlu1 %416 }
  0x91   : > { %v513_v33 = vpop.permute.xlu0 %512 }
  0xd8   : > { %v708_v14 = vpop.f32.mrf.mxu0 }
  0xd9   : > { %v405_v15 = vadd.f32 %v708_v14, %v324_v13 }
  0xda   : > { %v399_v17 = vpop.f32.mrf.mxu0 }
  0xdb   : > { %v409_v18 = vmax.f32 %v405_v15, 0.0  ;;  %v400_v19 = vadd.f32 %v399_v17, %v319_v16 }
  0xdd   : > { %v408_v20 = vmax.f32 %v400_v19, 0.0  ;;  %709 = vmatprep.subr.mxu1 %v409_v18 }
  0xde   : > { %710 = vmatpush3.msra.mxu1 %v409_v18 }
  0xdf   : > { %711 = vmatprep.subr.mxu1 %v408_v20 }
  0xe0   : > { %712 = vmatpush3.msra.mxu1 %v408_v20 }
  0xe1   : > { %714 = vmatmul.mubr.msk.f32.vlgmr.msra.gmra.mxu1 %vm424_vm1, %v411_v21  ;;  %716 = vmatprep.subr.mxu1 %v777_v22 }
  0xe2   : > { %720 = vmatprep.mubr.msk.f32.mxu1 %vm778_vm2, %v777_v22 }
 0x1a1   : > { %v715_v24 = vpop.f32.mrf.mxu1 }
 0x1a2   : > { %v503_v25 = vadd.f32 %v715_v24, %v422_v23 }
 0x1a3   : > { %v497_v27 = vpop.f32.mrf.mxu1 }
 0x1a4   : > { %v507_v28 = vmax.f32 %v503_v25, 0.0  ;;  %v498_v29 = vadd.f32 %v497_v27, %v417_v26 }
 0x1a6   : > { %v506_v30 = vmax.f32 %v498_v29, 0.0  ;;  %717 = vmatpush3.msra.mxu1 %v507_v28 }
 0x1a7   : > { %718 = vmatprep.subr.mxu1 %v777_v22 }
 0x1a8   : > { %719 = vmatpush3.msra.mxu1 %v506_v30 }
 0x1a9   : > { %721 = vmatmul.mubr.msk.f32.vlgmr.msra.gmra.mxu1 %vm424_vm1, %v508_v31 }
 0x269   : > { %v584_v34 = vpop.f32.mrf.mxu1 }
 0x26a   : > { %v585_v35 = vadd.f32 %v584_v34, %v513_v33 }
 0x26b   : > { %v722_v36 = vpop.f32.mrf.mxu1 }
 0x26c   : > { %v589_v37 = vadd.f32 %v588_v32, %v585_v35 }
 0x26e   : > { %591 = vst.msk [vmem:[%s307_s13] sm:$0x7] %vm590_vm3, %v589_v37 }
 0x26f PF: > { %s17_s26 = sadd.s32 1, %s774_s26   ;;  %s899_s24 = smov %s770_s25 }
 0x270   : > { %p14_p5 = scmp.ge.s32.totalorder %s17_s26, 4   ;;  %s900_s25 = smov %s902_s27 }
 0x272   :  { %16 = sbr.rel (!%p14_p5) target bundleno = 2 (0x2), region = 78 }

</bundles_post_ra>
